<compile_context>
chip_gen: v7x
topology: tpu7x:2x2x1
jax: 0.10.0
libtpu: 0.0.40
codegen_flags: <defaults>
</compile_context>

<pallas_src>
import jax
import jax.numpy as jnp
from jax.experimental import pallas as pl
from jax.experimental.pallas import tpu as pltpu


def _state_encoder_kernel(x_ref, w1_ref, b1_ref, w2_ref, b2_ref, o_ref):
    # Cast the f32 x tile to the MXU compute dtype in VMEM/registers (VPU),
    # so the HBM stream of x stays a single f32 read (no separate cast pass).
    x = x_ref[...].astype(w1_ref.dtype)
    # fc1 on the MXU: bf16 operands, f32 accumulation.
    h = jnp.dot(x, w1_ref[...], preferred_element_type=jnp.float32)
    h = h + b1_ref[...]                       # bias add in f32
    # SiLU (swish) in f32: exp on the EUP, mul/select on the VPU.
    h = h * jax.nn.sigmoid(h)
    # fc2: cast activations to the compute dtype, accumulate in f32.
    y = jnp.dot(h.astype(w2_ref.dtype), w2_ref[...],
                preferred_element_type=jnp.float32)
    o_ref[...] = (y + b2_ref[...]).astype(o_ref.dtype)


def state_encoder_forward(x, w1, b1, w2, b2, *, tile_b=1024,
                          compute_dtype=jnp.bfloat16,
                          out_dtype=jnp.float32):
    """Fused StateEncoder forward.

    x : (B, D_in) float32
    w1: (D_in, D_out), b1: (D_out,)   -- fc1 (weight transposed vs. PyTorch)
    w2: (D_out, D_out), b2: (D_out,)  -- fc2 (weight transposed vs. PyTorch)
    Returns (B, D_out) in `out_dtype`.
    """
    B, D_in = x.shape
    D_out = w1.shape[1]
    assert w1.shape == (D_in, D_out)
    assert w2.shape == (D_out, D_out)
    assert b1.shape == (D_out,) and b2.shape == (D_out,)

    # Tile selection: one big tile when the batch fits (no forced splitting),
    # otherwise stream tile_b-row tiles; the "parallel" grid lets v7x's two
    # TensorCores shard large batches while 1-TC chips just loop.
    tile_b = max(8, (tile_b // 8) * 8)        # keep sublane granularity
    if B <= tile_b:
        tb = B                                # block == full batch dim (legal
    else:                                     # even when B is not a mult of 8)
        tb = tile_b
    grid = (pl.cdiv(B, tb),)                  # partial edge block is fine

    # One-time casts of the tiny weights; biases stay f32 for the f32 epilogue.
    w1_c = w1.astype(compute_dtype)
    w2_c = w2.astype(compute_dtype)
    b1_2d = b1.reshape(1, D_out).astype(jnp.float32)
    b2_2d = b2.reshape(1, D_out).astype(jnp.float32)

    return pl.pallas_call(
        _state_encoder_kernel,
        out_shape=jax.ShapeDtypeStruct((B, D_out), out_dtype),
        grid_spec=pltpu.PrefetchScalarGridSpec(
            num_scalar_prefetch=0,
            grid=grid,
            in_specs=[
                pl.BlockSpec((tb, D_in), lambda i: (i, 0)),      # x tile (f32)
                pl.BlockSpec((D_in, D_out), lambda i: (0, 0)),   # W1 (resident)
                pl.BlockSpec((1, D_out), lambda i: (0, 0)),      # b1
                pl.BlockSpec((D_out, D_out), lambda i: (0, 0)),  # W2 (resident)
                pl.BlockSpec((1, D_out), lambda i: (0, 0)),      # b2
            ],
            out_specs=pl.BlockSpec((tb, D_out), lambda i: (i, 0)),
        ),
        compiler_params=pltpu.CompilerParams(
            dimension_semantics=("parallel",),
        ),
    )(x, w1_c, b1_2d, w2_c, b2_2d)


def _reference(x, w1, b1, w2, b2):
    h = x @ w1 + b1
    h = h * jax.nn.sigmoid(h)
    return h @ w2 + b2


if __name__ == "__main__":
    # Module defaults: input_dim=280, output_dim=256.
    D_in, D_out = 280, 256

    key = jax.random.PRNGKey(0)
    k_x, k_w1, k_b1, k_w2, k_b2, k_x2, k_x3 = jax.random.split(key, 7)

    # Synthetic params (already transposed to (in, out) layout).
    w1 = jax.random.normal(k_w1, (D_in, D_out), dtype=jnp.float32) / jnp.sqrt(D_in)
    b1 = jax.random.normal(k_b1, (D_out,), dtype=jnp.float32) * 0.01
    w2 = jax.random.normal(k_w2, (D_out, D_out), dtype=jnp.float32) / jnp.sqrt(D_out)
    b2 = jax.random.normal(k_b2, (D_out,), dtype=jnp.float32) * 0.01

    # Case 1: small batch -> single grid step, f32 output.
    B = 16
    x = jax.random.normal(k_x, (B, D_in), dtype=jnp.float32)
    out = jax.block_until_ready(state_encoder_forward(x, w1, b1, w2, b2))
    ref = _reference(x, w1, b1, w2, b2)
    assert out.shape == (B, D_out) and out.dtype == jnp.float32
    # bf16 matmul operands with f32 accumulation -> widened tolerance.
    assert jnp.allclose(out, ref, atol=3e-2, rtol=3e-2), "mismatch (B=16)"

    # Case 2: ragged batch (B=13) -> single full-dim tile, no padding anywhere.
    x2 = jax.random.normal(k_x2, (13, D_in), dtype=jnp.float32)
    out2 = jax.block_until_ready(state_encoder_forward(x2, w1, b1, w2, b2))
    ref2 = _reference(x2, w1, b1, w2, b2)
    assert out2.shape == (13, D_out)
    assert jnp.allclose(out2, ref2, atol=3e-2, rtol=3e-2), "mismatch (B=13)"

    # Case 3: multi-step grid with a partial edge block + bf16 output path.
    x3 = jax.random.normal(k_x3, (40, D_in), dtype=jnp.float32)
    out3 = jax.block_until_ready(
        state_encoder_forward(x3, w1, b1, w2, b2, tile_b=16,
                              out_dtype=jnp.bfloat16))
    ref3 = _reference(x3, w1, b1, w2, b2)
    assert out3.shape == (40, D_out) and out3.dtype == jnp.bfloat16
    assert jnp.allclose(out3.astype(jnp.float32), ref3, atol=6e-2, rtol=6e-2), \
        "mismatch (B=40, bf16 out)"

    print("KERNEL_OK")
</pallas_src>

<mosaic_0001>
module attributes {stable_mosaic.version = 11 : i64} {
  func.func @_state_encoder_kernel(%arg0: i32, %arg1: memref<16x280xf32, #tpu.memory_space<vmem>>, %arg2: memref<280x256xbf16, #tpu.memory_space<vmem>>, %arg3: memref<1x256xf32, #tpu.memory_space<vmem>>, %arg4: memref<256x256xbf16, #tpu.memory_space<vmem>>, %arg5: memref<1x256xf32, #tpu.memory_space<vmem>>, %arg6: memref<16x256xf32, #tpu.memory_space<vmem>>) attributes {dimension_semantics = [#tpu.dimension_semantics<parallel>], iteration_bounds = array<i64: 1>, scalar_prefetch = 0 : i64, scratch_operands = 0 : i64, tpu.core_type = #tpu.core_type<tc>, window_params = [{transform_indices = @transform_0, window_bounds = array<i64: 16, 280>}, {pipeline_mode = #tpu.pipeline_mode<synchronous>, transform_indices = @transform_1, window_bounds = array<i64: 280, 256>}, {pipeline_mode = #tpu.pipeline_mode<synchronous>, transform_indices = @transform_2, window_bounds = array<i64: 1, 256>}, {pipeline_mode = #tpu.pipeline_mode<synchronous>, transform_indices = @transform_3, window_bounds = array<i64: 256, 256>}, {pipeline_mode = #tpu.pipeline_mode<synchronous>, transform_indices = @transform_4, window_bounds = array<i64: 1, 256>}, {transform_indices = @transform_5, window_bounds = array<i64: 16, 256>}]} {
    %c0 = arith.constant 0 : index
    %c0_0 = arith.constant 0 : index
    %0 = vector.load %arg1[%c0, %c0_0] : memref<16x280xf32, #tpu.memory_space<vmem>>, vector<16x280xf32>
    %1 = arith.truncf %0 : vector<16x280xf32> to vector<16x280xbf16>
    %c0_1 = arith.constant 0 : index
    %c0_2 = arith.constant 0 : index
    %2 = vector.load %arg2[%c0_1, %c0_2] : memref<280x256xbf16, #tpu.memory_space<vmem>>, vector<280x256xbf16>
    %cst = arith.constant dense<0.000000e+00> : vector<16x256xf32>
    %3 = tpu.matmul %1, %2, %cst {dimension_numbers = #tpu.dot_dimension_numbers<[1], [0], [0], [1], [0, 0, 1, 1], [], []>} : vector<16x280xbf16>, vector<280x256xbf16>, vector<16x256xf32> -> vector<16x256xf32>
    %c0_3 = arith.constant 0 : index
    %c0_4 = arith.constant 0 : index
    %4 = vector.load %arg3[%c0_3, %c0_4] : memref<1x256xf32, #tpu.memory_space<vmem>>, vector<1x256xf32>
    %5 = vector.broadcast %4 : vector<1x256xf32> to vector<16x256xf32>
    %6 = arith.addf %3, %5 : vector<16x256xf32>
    %7 = arith.negf %6 : vector<16x256xf32>
    %8 = math.exp %7 : vector<16x256xf32>
    %cst_5 = arith.constant 1.000000e+00 : f32
    %9 = vector.broadcast %cst_5 : f32 to vector<16x256xf32>
    %10 = arith.addf %9, %8 : vector<16x256xf32>
    %11 = arith.divf %9, %10 : vector<16x256xf32>
    %12 = arith.mulf %6, %11 : vector<16x256xf32>
    %13 = arith.truncf %12 : vector<16x256xf32> to vector<16x256xbf16>
    %c0_6 = arith.constant 0 : index
    %c0_7 = arith.constant 0 : index
    %14 = vector.load %arg4[%c0_6, %c0_7] : memref<256x256xbf16, #tpu.memory_space<vmem>>, vector<256x256xbf16>
    %cst_8 = arith.constant dense<0.000000e+00> : vector<16x256xf32>
    %15 = tpu.matmul %13, %14, %cst_8 {dimension_numbers = #tpu.dot_dimension_numbers<[1], [0], [0], [1], [0, 0, 1, 1], [], []>} : vector<16x256xbf16>, vector<256x256xbf16>, vector<16x256xf32> -> vector<16x256xf32>
    %c0_9 = arith.constant 0 : index
    %c0_10 = arith.constant 0 : index
    %16 = vector.load %arg5[%c0_9, %c0_10] : memref<1x256xf32, #tpu.memory_space<vmem>>, vector<1x256xf32>
    %17 = vector.broadcast %16 : vector<1x256xf32> to vector<16x256xf32>
    %18 = arith.addf %15, %17 : vector<16x256xf32>
    %c0_11 = arith.constant 0 : index
    %c0_12 = arith.constant 0 : index
    %19 = vector.load %arg6[%c0_11, %c0_12] : memref<16x256xf32, #tpu.memory_space<vmem>>, vector<16x256xf32>
    tpu.vector_store %arg6[%c0_11, %c0_12], %18 {strides = array<i32>} : memref<16x256xf32, #tpu.memory_space<vmem>>, vector<16x256xf32>,
    return
  }
  func.func @transform_0(%arg0: i32) -> (i32, i32) {
    %c0_i32 = arith.constant 0 : i32
    %c0_i32_0 = arith.constant 0 : i32
    return %arg0, %c0_i32 : i32, i32
  }
  func.func @transform_1(%arg0: i32) -> (i32, i32) {
    %c0_i32 = arith.constant 0 : i32
    %c0_i32_0 = arith.constant 0 : i32
    %c0_i32_1 = arith.constant 0 : i32
    return %c0_i32, %c0_i32_0 : i32, i32
  }
  func.func @transform_2(%arg0: i32) -> (i32, i32) {
    %c0_i32 = arith.constant 0 : i32
    %c0_i32_0 = arith.constant 0 : i32
    %c0_i32_1 = arith.constant 0 : i32
    return %c0_i32, %c0_i32_0 : i32, i32
  }
  func.func @transform_3(%arg0: i32) -> (i32, i32) {
    %c0_i32 = arith.constant 0 : i32
    %c0_i32_0 = arith.constant 0 : i32
    %c0_i32_1 = arith.constant 0 : i32
    return %c0_i32, %c0_i32_0 : i32, i32
  }
  func.func @transform_4(%arg0: i32) -> (i32, i32) {
    %c0_i32 = arith.constant 0 : i32
    %c0_i32_0 = arith.constant 0 : i32
    %c0_i32_1 = arith.constant 0 : i32
    return %c0_i32, %c0_i32_0 : i32, i32
  }
  func.func @transform_5(%arg0: i32) -> (i32, i32) {
    %c0_i32 = arith.constant 0 : i32
    %c0_i32_0 = arith.constant 0 : i32
    return %arg0, %c0_i32 : i32, i32
  }
}

</mosaic_0001>

<bundles_post_ra>
// kernel: tpu_custom_call.1
= control target key start
LH: loop header
LB: loop body
LE: loop exit
PB: predicated region body
PF: predicated region fallthrough
CT: control target
= control target key end

     0   :  { %10 = vsyncpa [#allocation3], 0  ;;  %s1095_s0 = inlined_call_operand.hbm [shape: f32[16,280], index: 0, kind: input, shape index: {}]   ;;  %s1096_s1 = inlined_call_operand.hbm [shape: bf16[280,256], index: 1, kind: input, shape index: {}]   ;;  %s1097_s2 = inlined_call_operand.vmem [shape: f32[1,256], index: 2, kind: input, shape index: {}]   ;;  %s1098_s3 = inlined_call_operand.hbm [shape: bf16[256,256], index: 3, kind: input, shape index: {}]   ;;  %s1099_s4 = inlined_call_operand.vmem [shape: f32[1,256], index: 4, kind: input, shape index: {}]   ;;  %s1100_s5 = inlined_call_operand.hbm [shape: f32[16,256], index: 5, kind: output, shape index: {}]  }
   0x1   :  { %11 = vsyncpa [#allocation6], 0 }
   0x2   :  { %12 = vsyncpa [#allocation4], 0  ;;  %s994_s18 = smov [#allocation5]   ;;  %s900_s22 = scalar_lea.hbm %s1096_s1, 4480 }
   0x3   :  { %s30_s19 = sshll.u32 %s994_s18, 4  ;;  %p901_p0 = scmp.ne.s32.totalorder %s1096_s1, %s900_s22  ;;  %s31_s19 = int_to_ptr.vmem [resolvable:$true] %s30_s19 }
   0x4   :  { %p904_p1 = scmp.lt.u32.totalorder %s900_s22, %s1096_s1 }
   0x6   :  { %p906_p2 = pnand %p904_p1, %p901_p0 }
   0x8   :  { %909 = shalt.err (!%p906_p2)
}
   0x9   :  { %s910_s27 = scalar_lea.vmem %s31_s19, 4480  ;;  %p915_p4 = scmp.lt.s32.totalorder %s31_s19, %s31_s19 }
   0xa   :  { %p911_p3 = scmp.ne.s32.totalorder %s31_s19, %s910_s27  ;;  %p916_p5 = scmp.lt.s32.totalorder %s910_s27, %s910_s27 }
   0xc   :  { %p917_p6 = por %p916_p5, %p915_p4 }
   0xe   :  { %p918_p7 = pnand %p917_p6, %p911_p3 }
  0x10   :  { %921 = shalt.err (!%p918_p7)
}
  0x11   :  { %s995_s28 = smov 128   ;;  %s996_s29 = smov 8  }
  0x12   :  { %36 = dma.hbm_to_vmem [thread:$0]  %s1096_s1, 4480, %s31_s19, [#allocation6], %s995_s28, %s995_s28, %s996_s29  }
  0x13   :  { %s997_s7 = smov [#allocation2]   ;;  %s922_s11 = scalar_lea.hbm %s1095_s0, 768 }
  0x14   :  { %s18_s8 = sshll.u32 %s997_s7, 4  ;;  %p923_p8 = scmp.ne.s32.totalorder %s1095_s0, %s922_s11  ;;  %s19_s8 = int_to_ptr.vmem [resolvable:$true] %s18_s8 }
  0x15   :  { %p926_p9 = scmp.lt.u32.totalorder %s922_s11, %s1095_s0 }
  0x17   :  { %p928_p10 = pnand %p926_p9, %p923_p8 }
  0x19   :  { %931 = shalt.err (!%p928_p10)
}
  0x1a   :  { %s932_s16 = scalar_lea.vmem %s19_s8, 768  ;;  %p937_p12 = scmp.lt.s32.totalorder %s19_s8, %s19_s8 }
  0x1b   :  { %p933_p11 = scmp.ne.s32.totalorder %s19_s8, %s932_s16  ;;  %p938_p13 = scmp.lt.s32.totalorder %s932_s16, %s932_s16 }
  0x1d   :  { %p939_p0 = por %p938_p13, %p937_p12 }
  0x1f   :  { %p940_p1 = pnand %p939_p0, %p933_p11 }
  0x21   :  { %943 = shalt.err (!%p940_p1)
}
  0x22   :  { %s998_s1 = smov 384   ;;  %s999_s17 = smov 24  }
  0x23   :  { %24 = dma.hbm_to_vmem [thread:$0]  %s1095_s0, 768, %s19_s8, [#allocation3], %s998_s1, %s998_s1, %s999_s17  }
  0x24   :  { %s1000_s20 = smov [#allocation7]   ;;  %s944_s24 = scalar_lea.hbm %s1098_s3, 4096 }
  0x25   :  { %s44_s21 = sshll.u32 %s1000_s20, 4  ;;  %p945_p2 = scmp.ne.s32.totalorder %s1098_s3, %s944_s24  ;;  %s45_s21 = int_to_ptr.vmem [resolvable:$true] %s44_s21 }
  0x26   :  { %p948_p3 = scmp.lt.u32.totalorder %s944_s24, %s1098_s3 }
  0x28   :  { %p950_p4 = pnand %p948_p3, %p945_p2 }
  0x2a   :  { %953 = shalt.err (!%p950_p4)
}
  0x2b   :  { %s954_s6 = scalar_lea.vmem %s45_s21, 4096  ;;  %p959_p6 = scmp.lt.s32.totalorder %s45_s21, %s45_s21 }
  0x2c   :  { %p955_p5 = scmp.ne.s32.totalorder %s45_s21, %s954_s6  ;;  %p960_p7 = scmp.lt.s32.totalorder %s954_s6, %s954_s6 }
  0x2e   :  { %p961_p8 = por %p960_p7, %p959_p6 }
  0x30   :  { %p962_p9 = pnand %p961_p8, %p955_p5 }
  0x32   :  { %965 = shalt.err (!%p962_p9)
}
  0x33   :  { %50 = dma.hbm_to_vmem [thread:$0]  %s1098_s3, 4096, %s45_s21, [#allocation6], %s995_s28, %s995_s28, %s996_s29  }
  0x34   :  { %988 = dma.done.wait [#allocation3], 768  }
  0x35   :  { %989 = vsyncadd [#allocation3], 4294966528 }
  0x36   :  { %990 = dma.done.wait [#allocation6], 8576  }
  0x37   :  { %991 = vsyncadd [#allocation6], 4294958720  ;;  %v783_v0 = vld [vmem:[#allocation5 + $0x4] ss:$8 sps:$4 sm:$0xff]   ;;  %v785_v1 = vld [vmem:[#allocation5] ss:$8 sps:$4 sm:$0xff]  }
  0x38   :  { %305 = vmatprep.subr.bf16.mxu0 %v783_v0  ;;  %v786_v2 = vld [vmem:[#allocation5 + $0x14] ss:$8 sps:$4 sm:$0xff]   ;;  %v788_v3 = vld [vmem:[#allocation5 + $0x10] ss:$8 sps:$4 sm:$0xff]   ;;  %v789_v4 = vld [vmem:[#allocation5 + $0x24] ss:$8 sps:$4 sm:$0xff]  }
  0x39   :  { %306 = vmatpush1.bf16.msra.mxu0 %v785_v1  ;;  %v791_v5 = vld [vmem:[#allocation5 + $0x20] ss:$8 sps:$4 sm:$0xff]   ;;  %v792_v6 = vld [vmem:[#allocation5 + $0x34] ss:$8 sps:$4 sm:$0xff]   ;;  %v794_v7 = vld [vmem:[#allocation5 + $0x30] ss:$8 sps:$4 sm:$0xff]  }
  0x3a   :  { %307 = vmatprep.subr.bf16.mxu0 %v786_v2  ;;  %v795_v8 = vld [vmem:[#allocation5 + $0x44] ss:$8 sps:$4 sm:$0xff]   ;;  %v797_v9 = vld [vmem:[#allocation5 + $0x40] ss:$8 sps:$4 sm:$0xff]   ;;  %v798_v10 = vld [vmem:[#allocation5 + $0x54] ss:$8 sps:$4 sm:$0xff]  }
  0x3b   :  { %v800_v11 = vld [vmem:[#allocation5 + $0x50] ss:$8 sps:$4 sm:$0xff]   ;;  %v801_v12 = vld [vmem:[#allocation5 + $0x64] ss:$8 sps:$4 sm:$0xff]   ;;  %v803_v16 = vld [vmem:[#allocation5 + $0x60] ss:$8 sps:$4 sm:$0xff]  }
  0x3c   :  { %v64_v13 = vld [vmem:[#allocation2 + $0x8] sm:$0xff]  ;;  %v67_v14 = vld [vmem:[#allocation2 + $0x20] sm:$0xff]  ;;  %v807_v22 = vld [vmem:[#allocation5 + $0x84] ss:$8 sps:$4 sm:$0xff]   ;;  %vm298_vm0 = vcmask 1043456   ;;  %v1001_v57 = vmov 0  }
  0x3d   :  { %308 = vmatpush1.bf16.msra.mxu0 %v788_v3  ;;  %v70_v15 = vpack.c.bf16 %v67_v14, %v64_v13  ;;  %v804_v17 = vld [vmem:[#allocation5 + $0x74] ss:$8 sps:$4 sm:$0xff]   ;;  %v838_v19 = vld [vmem:[#allocation7] ss:$8 sps:$4 sm:$0xff]   ;;  %v841_v23 = vld [vmem:[#allocation7 + $0x10] ss:$8 sps:$4 sm:$0xff]  }
  0x3e   :  { %309 = vmatprep.subr.bf16.mxu0 %v789_v4  ;;  %v836_v18 = vld [vmem:[#allocation7 + $0x4] ss:$8 sps:$4 sm:$0xff]   ;;  %v806_v20 = vld [vmem:[#allocation5 + $0x70] ss:$8 sps:$4 sm:$0xff]   ;;  %v839_v21 = vld [vmem:[#allocation7 + $0x14] ss:$8 sps:$4 sm:$0xff]  }
  0x3f   :  { %337 = vmatprep.mubr.bf16.mxu0 %v70_v15  ;;  %625 = vmatprep.subr.bf16.mxu1 %v836_v18  ;;  %v842_v24 = vld [vmem:[#allocation7 + $0x24] ss:$8 sps:$4 sm:$0xff]   ;;  %v809_v25 = vld [vmem:[#allocation5 + $0x80] ss:$8 sps:$4 sm:$0xff]   ;;  %v812_v28 = vld [vmem:[#allocation5 + $0x90] ss:$8 sps:$4 sm:$0xff]  }
  0x40   :  { %626 = vmatpush1.bf16.msra.mxu1 %v838_v19  ;;  %v810_v26 = vld [vmem:[#allocation5 + $0x94] ss:$8 sps:$4 sm:$0xff]   ;;  %v844_v27 = vld [vmem:[#allocation7 + $0x20] ss:$8 sps:$4 sm:$0xff]   ;;  %v813_v30 = vld [vmem:[#allocation5 + $0xa4] ss:$8 sps:$4 sm:$0xff]  }
  0x41   :  { %310 = vmatpush1.bf16.msra.mxu0 %v791_v5  ;;  %627 = vmatprep.subr.bf16.mxu1 %v839_v21  ;;  %v845_v29 = vld [vmem:[#allocation7 + $0x34] ss:$8 sps:$4 sm:$0xff]   ;;  %v847_v31 = vld [vmem:[#allocation7 + $0x30] ss:$8 sps:$4 sm:$0xff]   ;;  %v848_v32 = vld [vmem:[#allocation7 + $0x44] ss:$8 sps:$4 sm:$0xff]  }
  0x42   :  { %311 = vmatprep.subr.bf16.mxu0 %v792_v6  ;;  %v815_v33 = vld [vmem:[#allocation5 + $0xa0] ss:$8 sps:$4 sm:$0xff]   ;;  %v816_v34 = vld [vmem:[#allocation5 + $0xb4] ss:$8 sps:$4 sm:$0xff]   ;;  %v818_v37 = vld [vmem:[#allocation5 + $0xb0] ss:$8 sps:$4 sm:$0xff]  }
  0x43   :  { %v850_v35 = vld [vmem:[#allocation7 + $0x40] ss:$8 sps:$4 sm:$0xff]   ;;  %v851_v36 = vld [vmem:[#allocation7 + $0x54] ss:$8 sps:$4 sm:$0xff]   ;;  %v853_v39 = vld [vmem:[#allocation7 + $0x50] ss:$8 sps:$4 sm:$0xff]  }
  0x44   :  { %628 = vmatpush1.bf16.msra.mxu1 %v841_v23  ;;  %v819_v38 = vld [vmem:[#allocation5 + $0xc4] ss:$8 sps:$4 sm:$0xff]   ;;  %v821_v41 = vld [vmem:[#allocation5 + $0xc0] ss:$8 sps:$4 sm:$0xff]   ;;  %v822_v42 = vld [vmem:[#allocation5 + $0xd4] ss:$8 sps:$4 sm:$0xff]  }
  0x45   :  { %312 = vmatpush1.bf16.msra.mxu0 %v794_v7  ;;  %629 = vmatprep.subr.bf16.mxu1 %v842_v24  ;;  %v854_v40 = vld [vmem:[#allocation7 + $0x64] ss:$8 sps:$4 sm:$0xff]   ;;  %v856_v43 = vld [vmem:[#allocation7 + $0x60] ss:$8 sps:$4 sm:$0xff]   ;;  %v63_v49 = vld [vmem:[#allocation2] sm:$0xff]  ;;  %vm294_vm1 = vcmask 195584  }
  0x46   :  { %313 = vmatprep.subr.bf16.mxu0 %v795_v8  ;;  %v824_v44 = vld [vmem:[#allocation5 + $0xd0] ss:$8 sps:$4 sm:$0xff]   ;;  %v825_v45 = vld [vmem:[#allocation5 + $0xe4] ss:$8 sps:$4 sm:$0xff]   ;;  %v827_v46 = vld [vmem:[#allocation5 + $0xe0] ss:$8 sps:$4 sm:$0xff]  }
  0x47   :  { %v828_v47 = vld [vmem:[#allocation5 + $0xf4] ss:$8 sps:$4 sm:$0xff]   ;;  %v830_v48 = vld [vmem:[#allocation5 + $0xf0] ss:$8 sps:$4 sm:$0xff]   ;;  %v66_v50 = vld [vmem:[#allocation2 + $0x18] sm:$0xff]  ;;  %s1002_s8 = smov [#allocation8]  }
  0x48   :  { %630 = vmatpush1.bf16.msra.mxu1 %v844_v27  ;;  %v833_v51 = vld [vmem:[#allocation5 + $0x104] ss:$8 sps:$4 sm:$0xff]   ;;  %v106_v52 = vld [vmem:[#allocation5 + $0x110] sm:$0xff]  ;;  %v69_v53 = vpack.c.bf16 %v66_v50, %v63_v49  ;;  %v831_v54 = vld [vmem:[#allocation5 + $0x100] ss:$8 sps:$4 sm:$0xff]   ;;  %s677_s9 = sshll.u32 %s1002_s8, 4  ;;  %s678_s9 = int_to_ptr.vmem [resolvable:$true] %s677_s9 }
  0x49   :  { %314 = vmatpush1.bf16.msra.mxu0 %v797_v9  ;;  %631 = vmatprep.subr.bf16.mxu1 %v845_v29  ;;  %v725_v55 = vcombine.high %v106_v52, %v106_v52  ;;  %v724_v56 = vcombine.low %v106_v52, %v106_v52  ;;  %v65_v59 = vld [vmem:[#allocation2 + $0x10] sm:$0xff]  ;;  %v68_v60 = vld [vmem:[#allocation2 + $0x28] sm:$0xff]  ;;  %v857_v62 = vld [vmem:[#allocation7 + $0x74] ss:$8 sps:$4 sm:$0xff]   ;;  %s966_s10 = scalar_lea.vmem %s678_s9, 512  ;;  %p971_p11 = scmp.lt.s32.totalorder %s678_s9, %s678_s9 }
  0x4a   :  { %315 = vmatprep.subr.bf16.mxu0 %v798_v10  ;;  %v71_v61 = vpack.c.bf16 %v68_v60, %v65_v59  ;;  %v859_v63 = vld [vmem:[#allocation7 + $0x70] ss:$8 sps:$4 sm:$0xff]   ;;  %v860_v0 = vld [vmem:[#allocation7 + $0x84] ss:$8 sps:$4 sm:$0xff]   ;;  %v862_v1 = vld [vmem:[#allocation7 + $0x80] ss:$8 sps:$4 sm:$0xff]   ;;  %p967_p10 = scmp.ne.s32.totalorder %s678_s9, %s966_s10  ;;  %p972_p12 = scmp.lt.s32.totalorder %s966_s10, %s966_s10 }
  0x4b   :  { %v300_v58 = vsel %vm298_vm0, %v724_v56, 0  ;;  %v863_v2 = vld [vmem:[#allocation7 + $0x94] ss:$8 sps:$4 sm:$0xff]   ;;  %v865_v3 = vld [vmem:[#allocation7 + $0x90] ss:$8 sps:$4 sm:$0xff]  }
  0x4c   :  { %632 = vmatpush1.bf16.msra.mxu1 %v847_v31  ;;  %v866_v4 = vld [vmem:[#allocation7 + $0xa4] ss:$8 sps:$4 sm:$0xff]   ;;  %v868_v5 = vld [vmem:[#allocation7 + $0xa0] ss:$8 sps:$4 sm:$0xff]   ;;  %v869_v6 = vld [vmem:[#allocation7 + $0xb4] ss:$8 sps:$4 sm:$0xff]   ;;  %p973_p13 = por %p972_p12, %p971_p11 }
  0x4d   :  { %316 = vmatpush1.bf16.msra.mxu0 %v800_v11  ;;  %633 = vmatprep.subr.bf16.mxu1 %v848_v32  ;;  %v871_v7 = vld [vmem:[#allocation7 + $0xb0] ss:$8 sps:$4 sm:$0xff]   ;;  %v872_v8 = vld [vmem:[#allocation7 + $0xc4] ss:$8 sps:$4 sm:$0xff]   ;;  %v874_v9 = vld [vmem:[#allocation7 + $0xc0] ss:$8 sps:$4 sm:$0xff]  }
  0x4e   :  { %317 = vmatprep.subr.bf16.mxu0 %v801_v12  ;;  %v875_v10 = vld [vmem:[#allocation7 + $0xd4] ss:$8 sps:$4 sm:$0xff]   ;;  %v877_v11 = vld [vmem:[#allocation7 + $0xd0] ss:$8 sps:$4 sm:$0xff]   ;;  %v878_v12 = vld [vmem:[#allocation7 + $0xe4] ss:$8 sps:$4 sm:$0xff]   ;;  %p974_p0 = pnand %p973_p13, %p967_p10 }
  0x4f   :  { %v880_v13 = vld [vmem:[#allocation7 + $0xe0] ss:$8 sps:$4 sm:$0xff]   ;;  %v881_v14 = vld [vmem:[#allocation7 + $0xf4] ss:$8 sps:$4 sm:$0xff]   ;;  %v883_v15 = vld [vmem:[#allocation7 + $0xf0] ss:$8 sps:$4 sm:$0xff]  }
  0x50   :  { %634 = vmatpush1.bf16.msra.mxu1 %v850_v35  ;;  %v107_v19 = vld [vmem:[%s1097_s2] sm:$0x3] }
  0x51   :  { %318 = vmatpush1.bf16.msra.mxu0 %v803_v16  ;;  %635 = vmatprep.subr.bf16.mxu1 %v851_v36  ;;  %v109_v16 = vlaneseq }
  0x52   :  { %319 = vmatprep.subr.bf16.mxu0 %v804_v17 }
  0x53   :  { %v110_v17 = vshrl.u32 %v109_v16, 7 }
  0x54   :  { %636 = vmatpush1.bf16.msra.mxu1 %v853_v39 }
  0x55   :  { %320 = vmatpush1.bf16.msra.mxu0 %v806_v20  ;;  %637 = vmatprep.subr.bf16.mxu1 %v854_v40  ;;  %v111_v18 = vsub.s32 0, %v110_v17  ;;  %v115_v20 = vsub.s32 1, %v110_v17 }
  0x56   :  { %321 = vmatprep.subr.bf16.mxu0 %v807_v22 }
  0x57   :  { %v112_v21 = vrot.slane %v107_v19, %v111_v18  ;;  %v116_v22 = vrot.slane %v107_v19, %v115_v20 }
  0x58   :  { %638 = vmatpush1.bf16.msra.mxu1 %v856_v43 }
  0x59   :  { %322 = vmatpush1.bf16.msra.mxu0 %v809_v25  ;;  %639 = vmatprep.subr.bf16.mxu1 %v857_v62 }
  0x5a   :  { %323 = vmatprep.subr.bf16.mxu0 %v810_v26 }
  0x5c   :  { %640 = vmatpush1.bf16.msra.mxu1 %v859_v63 }
  0x5d   :  { %324 = vmatpush1.bf16.msra.mxu0 %v812_v28  ;;  %641 = vmatprep.subr.bf16.mxu1 %v860_v0 }
  0x5e   :  { %325 = vmatprep.subr.bf16.mxu0 %v813_v30 }
  0x60   :  { %642 = vmatpush1.bf16.msra.mxu1 %v862_v1 }
  0x61   :  { %326 = vmatpush1.bf16.msra.mxu0 %v815_v33  ;;  %643 = vmatprep.subr.bf16.mxu1 %v863_v2 }
  0x62   :  { %327 = vmatprep.subr.bf16.mxu0 %v816_v34 }
  0x64   :  { %644 = vmatpush1.bf16.msra.mxu1 %v865_v3 }
  0x65   :  { %328 = vmatpush1.bf16.msra.mxu0 %v818_v37  ;;  %645 = vmatprep.subr.bf16.mxu1 %v866_v4 }
  0x66   :  { %329 = vmatprep.subr.bf16.mxu0 %v819_v38 }
  0x68   :  { %646 = vmatpush1.bf16.msra.mxu1 %v868_v5 }
  0x69   :  { %330 = vmatpush1.bf16.msra.mxu0 %v821_v41  ;;  %647 = vmatprep.subr.bf16.mxu1 %v869_v6 }
  0x6a   :  { %331 = vmatprep.subr.bf16.mxu0 %v822_v42 }
  0x6c   :  { %648 = vmatpush1.bf16.msra.mxu1 %v871_v7 }
  0x6d   :  { %332 = vmatpush1.bf16.msra.mxu0 %v824_v44  ;;  %649 = vmatprep.subr.bf16.mxu1 %v872_v8 }
  0x6e   :  { %333 = vmatprep.subr.bf16.mxu0 %v825_v45 }
  0x70   :  { %650 = vmatpush1.bf16.msra.mxu1 %v874_v9 }
  0x71   :  { %334 = vmatpush1.bf16.msra.mxu0 %v827_v46  ;;  %651 = vmatprep.subr.bf16.mxu1 %v875_v10 }
  0x72   :  { %335 = vmatprep.subr.bf16.mxu0 %v828_v47 }
  0x74   :  { %652 = vmatpush1.bf16.msra.mxu1 %v877_v11 }
  0x75   :  { %336 = vmatpush1.bf16.msra.mxu0 %v830_v48  ;;  %653 = vmatprep.subr.bf16.mxu1 %v878_v12 }
  0x76   :  { %348 = vmatprep.subr.bf16.mxu0 %v833_v51 }
  0x78   :  { %338 = vmatmul.mubr.bf16.vlgmr.msra.gmra.mrb[0].mxu0 %v69_v53  ;;  %654 = vmatpush1.bf16.msra.mxu1 %v880_v13  ;;  %v453_v53 = vld [vmem:[%s1099_s4] sm:$0x3] }
  0x79   :  { %349 = vmatpush1.bf16.msra.mxu0 %v831_v54  ;;  %380 = vmatprep.mubr.bf16.mxu0 %v1001_v57  ;;  %v458_v54 = vrot.slane %v453_v53, %v111_v18 }
  0x7a   :  { %726 = vmatprep.subr.msk.bf16.mxu0 %vm298_vm0, %v725_v55  ;;  %655 = vmatprep.subr.bf16.mxu1 %v881_v14  ;;  %v462_v55 = vrot.slane %v453_v53, %v115_v20 }
  0x7c   :  { %656 = vmatpush1.bf16.msra.mxu1 %v883_v15 }
  0x7d   :  { %351 = vmatpush1.bf16.msra.mxu0 %v300_v58 }
  0x84   :  { %727 = vmatmul.mubr.msk.bf16.vlgmr.msra.gmra.mrb[0].mxu0 %vm294_vm1, %v71_v61 }
 0x157   :  { %v382_v23 = vpop.f32.mrb[0].mxu0 }
 0x158   :  { %v764_v24 = vadd.f32 %v382_v23, %v112_v21  ;;  %v384_v25 = vpop.f32.mrb[1].mxu0 }
 0x159   :  { %v765_v26 = vadd.f32 %v384_v25, %v116_v22  ;;  %v386_v27 = vpop.f32.mrb[2].mxu0 }
 0x15a   :  { %v728_v28 = vmul.f32 -1.442695, %v764_v24  ;;  %v766_v29 = vadd.f32 %v386_v27, %v112_v21  ;;  %v388_v30 = vpop.f32.mrb[3].mxu0 }
 0x15b   :  { %v729_v31 = vmul.f32 -1.442695, %v765_v26  ;;  %v767_v32 = vadd.f32 %v388_v30, %v116_v22 }
 0x15c   :  { %884 = vpow2.f32 %v728_v28  ;;  %v730_v33 = vmul.f32 -1.442695, %v766_v29 }
 0x15d   :  { %886 = vpow2.f32 %v729_v31  ;;  %v731_v34 = vmul.f32 -1.442695, %v767_v32 }
 0x15e   :  { %888 = vpow2.f32 %v730_v33 }
 0x15f   :  { %890 = vpow2.f32 %v731_v34 }
 0x166   :  { %v885_v35 = vpop.eup %884 }
 0x167   :  { %v887_v36 = vpop.eup %886  ;;  %v403_v37 = vadd.f32 1.0, %v885_v35 }
 0x168   :  { %v889_v38 = vpop.eup %888  ;;  %v404_v39 = vadd.f32 1.0, %v887_v36 }
 0x169   :  { %v891_v40 = vpop.eup %890  ;;  %892 = vrcp.f32 %v403_v37  ;;  %v405_v41 = vadd.f32 1.0, %v889_v38 }
 0x16a   :  { %894 = vrcp.f32 %v404_v39  ;;  %v406_v42 = vadd.f32 1.0, %v891_v40 }
 0x16b   :  { %896 = vrcp.f32 %v405_v41 }
 0x16c   :  { %898 = vrcp.f32 %v406_v42 }
 0x173   :  { %v893_v43 = vpop.eup %892 }
 0x174   :  { %v895_v44 = vpop.eup %894  ;;  %v415_v47 = vmul.f32 %v893_v43, %v764_v24 }
 0x175   :  { %v897_v45 = vpop.eup %896  ;;  %v416_v49 = vmul.f32 %v895_v44, %v765_v26 }
 0x176   :  { %v899_v46 = vpop.eup %898  ;;  %v417_v48 = vmul.f32 %v897_v45, %v766_v29 }
 0x177   :  { %v418_v50 = vmul.f32 %v899_v46, %v767_v32 }
 0x178   :  { %v419_v51 = vpack.c.bf16 %v417_v48, %v415_v47 }
 0x179   :  { %v420_v52 = vpack.c.bf16 %v418_v50, %v416_v49 }
 0x17b   :  { %657 = vmatprep.mubr.bf16.mxu1 %v420_v52 }
 0x17c   :  { %658 = vmatmul.mubr.bf16.vlgmr.msra.gmra.mrb[0].mxu1 %v419_v51 }
 0x24f   :  { %v659_v56 = vpop.f32.mrb[0].mxu1 }
 0x250   :  { %v660_v57 = vadd.f32 %v659_v56, %v458_v54  ;;  %v661_v58 = vpop.f32.mrb[1].mxu1 }
 0x251   :  { %v662_v59 = vadd.f32 %v661_v58, %v462_v55  ;;  %v663_v60 = vpop.f32.mrb[2].mxu1 }
 0x252   :  { %668 = vst [vmem:[#allocation8] sm:$0xff] %v660_v57  ;;  %v664_v61 = vadd.f32 %v663_v60, %v458_v54  ;;  %v665_v62 = vpop.f32.mrb[3].mxu1 }
 0x253   :  { %669 = vst [vmem:[#allocation8 + $0x8] sm:$0xff] %v662_v59  ;;  %v666_v63 = vadd.f32 %v665_v62, %v462_v55 }
 0x254   :  { %670 = vst [vmem:[#allocation8 + $0x10] sm:$0xff] %v664_v61 }
 0x255   :  { %671 = vst [vmem:[#allocation8 + $0x18] sm:$0xff] %v666_v63 }
 0x256   :  { %977 = shalt.err (!%p974_p0)
}
 0x257   :  { %s978_s12 = scalar_lea.hbm %s1100_s5, 512 }
 0x258   :  { %p979_p1 = scmp.ne.s32.totalorder %s1100_s5, %s978_s12  ;;  %p982_p2 = scmp.lt.u32.totalorder %s978_s12, %s1100_s5 }
 0x25a   :  { %p984_p3 = pnand %p982_p2, %p979_p1 }
 0x25c   :  { %987 = shalt.err (!%p984_p3)
}
 0x25d   :  { %s1003_s1 = smov 256   ;;  %s1004_s17 = smov 16  }
 0x25e   :  { %683 = dma.vmem_to_hbm [thread:$0]  %s678_s9, 512, %s1100_s5, [#allocation4], %s1003_s1, %s1003_s1, %s1004_s17  }
 0x25f   :  { %992 = dma.done.wait [#allocation4], 512  }
 0x260   :  { %993 = vsyncadd [#allocation4], 4294966784 }
 0x261   :  { %687 = vsyncpa [#allocation3], 1 }
 0x262   :  { %688 = vsyncpa [#allocation6], 1 }
 0x263   :  { %689 = vsyncpa [#allocation4], 1 }

</bundles_post_ra>
